<compile_context>
chip_gen: v6e
topology: v6e:2x2x1
jax: 0.10.0
libtpu: 0.0.40
codegen_flags: <defaults>
</compile_context>

<pallas_src>
import functools

import jax
import jax.numpy as jnp
from jax.experimental import pallas as pl
from jax.experimental.pallas import tpu as pltpu

_MIB = 1024 * 1024


def _round_up(x, m):
    return (x + m - 1) // m * m


def _pick_tile(n_pad, preferred):
    """Largest tile <= preferred that divides n_pad (n_pad is a multiple of 128)."""
    t = min(preferred, n_pad)
    while n_pad % t != 0:
        t //= 2
    return max(t, 128) if n_pad >= 128 else n_pad


def _pad2(x, shape):
    pads = [(0, s - d) for d, s in zip(x.shape, shape)]
    return jnp.pad(x, pads)


def _vmem_budget_bytes():
    """Per-chip VMEM budget: ~75% of physical VMEM, conservative default for v7x."""
    cap = 64 * _MIB  # v7x per-TC physical VMEM (worst case)
    try:
        cap = int(pltpu.get_tpu_info().vmem_capacity_bytes)
    except Exception:
        pass
    return max(32 * _MIB, min(int(cap * 0.75), 100 * _MIB))


# ----------------------------------------------------------------------------
# Kernel 1: fused projection  [Y | root] = X @ [W_l | W_r]   (bf16 in / bf16 out)
# ----------------------------------------------------------------------------
def _proj_kernel(x_ref, w_ref, y_ref):
    y_ref[...] = jnp.dot(
        x_ref[...], w_ref[...], preferred_element_type=jnp.float32
    ).astype(y_ref.dtype)


def _fused_projection(x_bf16, w_bf16, *, budget, tm=1024):
    n_pad, f_in = x_bf16.shape
    f_out2 = w_bf16.shape[1]
    tm = _pick_tile(n_pad, tm)
    if n_pad // tm < 2 and n_pad >= 256:   # keep >=2 row tiles for megacore
        tm = _pick_tile(n_pad, n_pad // 2)
    return pl.pallas_call(
        _proj_kernel,
        out_shape=jax.ShapeDtypeStruct((n_pad, f_out2), jnp.bfloat16),
        grid_spec=pltpu.PrefetchScalarGridSpec(
            num_scalar_prefetch=0,
            grid=(n_pad // tm,),
            in_specs=[
                pl.BlockSpec((tm, f_in), lambda i: (i, 0)),
                pl.BlockSpec((f_in, f_out2), lambda i: (0, 0)),
            ],
            out_specs=pl.BlockSpec((tm, f_out2), lambda i: (i, 0)),
        ),
        compiler_params=pltpu.CompilerParams(
            dimension_semantics=("parallel",),
            vmem_limit_bytes=budget,
        ),
        cost_estimate=pl.CostEstimate(
            flops=int(2 * n_pad * f_in * f_out2),
            transcendentals=0,
            bytes_accessed=int(2 * (n_pad * f_in + f_in * f_out2 + n_pad * f_out2)),
        ),
    )(x_bf16, w_bf16)


# ----------------------------------------------------------------------------
# Kernel 2: tiled mean aggregation + root branch + bias (+ sigmoid)
#   acc_i += A_counts[i, k_tile] @ Y[k_tile]            (bf16 MXU, f32 accum)
#   out_i  = acc_i * inv_deg_i + root_i + b              (finalize at last k)
# ----------------------------------------------------------------------------
def _sage_agg_kernel(a_ref, y_ref, root_ref, b_ref, invdeg_ref,
                     o_ref, acc_ref, *, apply_sigmoid):
    k = pl.program_id(1)

    @pl.when(k == 0)
    def _():
        acc_ref[...] = jnp.zeros_like(acc_ref)

    tk = a_ref.shape[1]
    if y_ref.shape[0] == tk:
        # Streamed (tk, F_out) block (index_map (k, 0)).
        y = y_ref[...]
    else:
        # Whole Y resident in VMEM: slice the k-th row window.
        y = y_ref[pl.ds(pl.multiple_of(k * tk, 128), tk), :]

    acc_ref[...] += jnp.dot(a_ref[...], y, preferred_element_type=jnp.float32)

    @pl.when(k == pl.num_programs(1) - 1)
    def _():
        out = acc_ref[...] * invdeg_ref[...]               # fused 1/deg
        out = out + root_ref[...].astype(jnp.float32)      # root branch (precomputed)
        out = out + b_ref[...]
        if apply_sigmoid:
            out = jax.nn.sigmoid(out)
        o_ref[...] = out.astype(o_ref.dtype)


def sage_conv(a_counts, inv_deg, proj, bias, *, f_out, apply_sigmoid=False,
              out_dtype=jnp.float32, budget=None):
    """One SAGEConv layer on padded operands.

    a_counts: (Np, Np)    bf16 unnormalized edge-count adjacency (dst rows, src cols)
    inv_deg:  (Np, 1)     f32 1/in_degree (clipped to >= 1)
    proj:     (Np, 2*Fo)  bf16 [X @ W_l | X @ W_r]
    bias:     (1, Fo)     f32
    """
    if budget is None:
        budget = _vmem_budget_bytes()
    n_pad = a_counts.shape[0]
    out_bytes = jnp.dtype(out_dtype).itemsize

    # ---- tile selection: big A tiles (bandwidth-critical), >=2 row tiles ----
    tm = _pick_tile(n_pad, 1024)
    if n_pad // tm < 2 and n_pad >= 256:
        tm = _pick_tile(n_pad, n_pad // 2)
    tk = _pick_tile(n_pad, 8192 if budget >= 90 * _MIB else 4096)

    def fixed_bytes(tm_):
        return (2 * tm_ * f_out * 2              # root blocks, double-buffered bf16
                + tm_ * f_out * 4                # acc scratch f32
                + 2 * tm_ * f_out * out_bytes    # output blocks, double-buffered
                + 2 * tm_ * 4 + 2 * f_out * 4    # inv_deg + bias
                + 2 * _MIB)                      # compiler slack

    while (2 * tm * tk * 2 + fixed_bytes(tm) + 2 * tk * f_out * 2 > budget
           and tk > 512):
        tk = _pick_tile(n_pad, tk // 2)

    # Resident Y (constant index_map -> fetched once) when it fits the budget.
    y_resident = (2 * tm * tk * 2 + fixed_bytes(tm)
                  + 2 * n_pad * f_out * 2) <= budget
    if y_resident:
        y_spec = pl.BlockSpec((n_pad, f_out), lambda i, k: (0, 0))
        y_read_bytes = n_pad * f_out * 2
    else:
        y_spec = pl.BlockSpec((tk, f_out), lambda i, k: (k, 0))
        y_read_bytes = (n_pad // tm) * n_pad * f_out * 2   # re-streamed per row tile

    kernel = functools.partial(_sage_agg_kernel, apply_sigmoid=apply_sigmoid)
    cost = pl.CostEstimate(
        flops=int(2 * n_pad * n_pad * f_out),
        transcendentals=int(n_pad * f_out) if apply_sigmoid else 0,
        bytes_accessed=int(2 * n_pad * n_pad          # A (bf16)
                           + y_read_bytes             # Y
                           + 2 * n_pad * f_out        # root (bf16)
                           + 4 * n_pad                # inv_deg
                           + 4 * f_out                # bias
                           + out_bytes * n_pad * f_out),
    )

    return pl.pallas_call(
        kernel,
        out_shape=jax.ShapeDtypeStruct((n_pad, f_out), out_dtype),
        grid_spec=pltpu.PrefetchScalarGridSpec(
            num_scalar_prefetch=0,
            grid=(n_pad // tm, n_pad // tk),
            in_specs=[
                pl.BlockSpec((tm, tk), lambda i, k: (i, k)),       # A counts (bf16)
                y_spec,                                            # Y = X @ W_l (bf16)
                pl.BlockSpec((tm, f_out), lambda i, k: (i, 1)),    # root = X @ W_r
                pl.BlockSpec((1, f_out), lambda i, k: (0, 0)),     # bias
                pl.BlockSpec((tm, 1), lambda i, k: (i, 0)),        # 1/deg
            ],
            out_specs=pl.BlockSpec((tm, f_out), lambda i, k: (i, 0)),
            scratch_shapes=[pltpu.VMEM((tm, f_out), jnp.float32)],
        ),
        compiler_params=pltpu.CompilerParams(
            dimension_semantics=("parallel", "arbitrary"),
            vmem_limit_bytes=budget,
        ),
        cost_estimate=cost,
    )(a_counts, proj, proj, bias, inv_deg)


# ----------------------------------------------------------------------------
# Graph preprocessing (XLA glue)
# ----------------------------------------------------------------------------
def build_adjacency(edge_index, num_nodes, n_pad):
    """Unnormalized count adjacency (bf16) + per-row inverse degree (f32).

    Counts are accumulated in f32 and cast to bf16 once, so multi-edge counts do
    not silently saturate during accumulation (matches PyG scatter-mean, where
    duplicate edges are counted).
    """
    del num_nodes
    src = edge_index[0]
    dst = edge_index[1]
    ones = jnp.ones(src.shape, jnp.float32)
    counts = jnp.zeros((n_pad, n_pad), jnp.float32).at[dst, src].add(ones)
    deg = jnp.sum(counts, axis=1, keepdims=True)
    inv_deg = 1.0 / jnp.clip(deg, 1.0, None)
    return counts.astype(jnp.bfloat16), inv_deg


def init_params(key, in_channels, hidden_channels, out_channels):
    """Synthetic params matching SAGEConv Linear shapes, stored as (in, out)."""
    ks = jax.random.split(key, 4)

    def glorot(k, fan_in, fan_out):
        scale = jnp.sqrt(2.0 / (fan_in + fan_out))
        return jax.random.normal(k, (fan_in, fan_out), jnp.float32) * scale

    return {
        "w_l1": glorot(ks[0], in_channels, hidden_channels),
        "w_r1": glorot(ks[1], in_channels, hidden_channels),
        "b1": jnp.zeros((1, hidden_channels), jnp.float32),
        "w_l2": glorot(ks[2], hidden_channels, out_channels),
        "w_r2": glorot(ks[3], hidden_channels, out_channels),
        "b2": jnp.zeros((1, out_channels), jnp.float32),
    }


def node_graph_sage(x, edge_index, params):
    n, f_in = x.shape
    hidden = params["w_l1"].shape[1]
    f_out = params["w_l2"].shape[1]

    # Pad to lane-dense / (8,128)-friendly sizes. Zero padding is inert: padded
    # weight rows/cols keep padded lanes from leaking into real outputs.
    n_pad = _round_up(n, 128)
    f_in_p = _round_up(f_in, 128)
    hid_p = _round_up(hidden, 128)
    f_out_p = _round_up(f_out, 128)

    budget = _vmem_budget_bytes()

    a, inv_deg = build_adjacency(edge_index, n, n_pad)

    x_p = _pad2(x, (n_pad, f_in_p)).astype(jnp.bfloat16)
    # Fused [W_l | W_r] weights, bf16 (256-wide MXU output on v6e/v7x).
    w1 = jnp.concatenate(
        [_pad2(params["w_l1"], (f_in_p, hid_p)),
         _pad2(params["w_r1"], (f_in_p, hid_p))], axis=1).astype(jnp.bfloat16)
    w2 = jnp.concatenate(
        [_pad2(params["w_l2"], (hid_p, f_out_p)),
         _pad2(params["w_r2"], (hid_p, f_out_p))], axis=1).astype(jnp.bfloat16)
    b1 = _pad2(params["b1"], (1, hid_p))
    b2 = _pad2(params["b2"], (1, f_out_p))

    # Layer 1: X read once (fused projection), h emitted in bf16.
    proj1 = _fused_projection(x_p, w1, budget=budget)          # [Y1 | root1]
    h = sage_conv(a, inv_deg, proj1, b1, f_out=hid_p,
                  apply_sigmoid=True, out_dtype=jnp.bfloat16, budget=budget)
    # Padded hidden lanes of h hold sigmoid(0)=0.5; harmless because the matching
    # rows of w2 are zero-padded.

    # Layer 2.
    proj2 = _fused_projection(h, w2, budget=budget)            # [Y2 | root2]
    out = sage_conv(a, inv_deg, proj2, b2, f_out=f_out_p,
                    apply_sigmoid=False, out_dtype=jnp.float32, budget=budget)
    return out[:n, :f_out]


def _reference(x, edge_index, params):
    """Pure-JAX f32 reference of the two-layer SAGE forward."""
    n = x.shape[0]
    a = jnp.zeros((n, n), jnp.float32).at[edge_index[1], edge_index[0]].add(1.0)
    deg = jnp.clip(jnp.sum(a, axis=1, keepdims=True), 1.0, None)
    a = a / deg

    def conv(a, x, wl, wr, b):
        return a @ (x @ wl) + x @ wr + b

    h = jax.nn.sigmoid(conv(a, x, params["w_l1"], params["w_r1"], params["b1"]))
    return conv(a, h, params["w_l2"], params["w_r2"], params["b2"])


if __name__ == "__main__":
    key = jax.random.PRNGKey(0)
    k_x, k_e, k_p = jax.random.split(key, 3)

    num_nodes = 16
    in_channels = 8
    hidden_channels = 32
    out_channels = 4
    num_edges = 40

    x = jax.random.normal(k_x, (num_nodes, in_channels), jnp.float32)
    edge_index = jax.random.randint(k_e, (2, num_edges), 0, num_nodes,
                                    dtype=jnp.int32)
    params = init_params(k_p, in_channels, hidden_channels, out_channels)

    out = node_graph_sage(x, edge_index, params)
    jax.block_until_ready(out)

    assert out.shape == (num_nodes, out_channels)
    assert jnp.all(jnp.isfinite(out))

    ref = _reference(x, edge_index, params)
    # bf16 A / X / Y / h streaming -> loosened tolerance.
    assert jnp.allclose(out, ref, rtol=5e-2, atol=5e-2), (
        f"max abs err {jnp.max(jnp.abs(out - ref))}")

    print("KERNEL_OK")
</pallas_src>

<mosaic_0001>
module attributes {stable_mosaic.version = 11 : i64} {
  func.func @_proj_kernel(%arg0: i32, %arg1: memref<128x128xbf16, #tpu.memory_space<vmem>>, %arg2: memref<128x256xbf16, #tpu.memory_space<vmem>>, %arg3: memref<128x256xbf16, #tpu.memory_space<vmem>>) attributes {dimension_semantics = [#tpu.dimension_semantics<parallel>], iteration_bounds = array<i64: 1>, scalar_prefetch = 0 : i64, scratch_operands = 0 : i64, tpu.core_type = #tpu.core_type<tc>, window_params = [{transform_indices = @transform_0, window_bounds = array<i64: 128, 128>}, {pipeline_mode = #tpu.pipeline_mode<synchronous>, transform_indices = @transform_1, window_bounds = array<i64: 128, 256>}, {transform_indices = @transform_2, window_bounds = array<i64: 128, 256>}]} {
    %c0 = arith.constant 0 : index
    %c0_0 = arith.constant 0 : index
    %0 = vector.load %arg1[%c0, %c0_0] : memref<128x128xbf16, #tpu.memory_space<vmem>>, vector<128x128xbf16>
    %c0_1 = arith.constant 0 : index
    %c0_2 = arith.constant 0 : index
    %1 = vector.load %arg2[%c0_1, %c0_2] : memref<128x256xbf16, #tpu.memory_space<vmem>>, vector<128x256xbf16>
    %cst = arith.constant dense<0.000000e+00> : vector<128x256xf32>
    %2 = tpu.matmul %0, %1, %cst {dimension_numbers = #tpu.dot_dimension_numbers<[1], [0], [0], [1], [0, 0, 1, 1], [], []>} : vector<128x128xbf16>, vector<128x256xbf16>, vector<128x256xf32> -> vector<128x256xf32>
    %3 = arith.truncf %2 : vector<128x256xf32> to vector<128x256xbf16>
    %c0_3 = arith.constant 0 : index
    %c0_4 = arith.constant 0 : index
    %4 = vector.load %arg3[%c0_3, %c0_4] : memref<128x256xbf16, #tpu.memory_space<vmem>>, vector<128x256xbf16>
    tpu.vector_store %arg3[%c0_3, %c0_4], %3 {strides = array<i32>} : memref<128x256xbf16, #tpu.memory_space<vmem>>, vector<128x256xbf16>,
    return
  }
  func.func @transform_0(%arg0: i32) -> (i32, i32) {
    %c0_i32 = arith.constant 0 : i32
    %c0_i32_0 = arith.constant 0 : i32
    return %arg0, %c0_i32 : i32, i32
  }
  func.func @transform_1(%arg0: i32) -> (i32, i32) {
    %c0_i32 = arith.constant 0 : i32
    %c0_i32_0 = arith.constant 0 : i32
    %c0_i32_1 = arith.constant 0 : i32
    return %c0_i32, %c0_i32_0 : i32, i32
  }
  func.func @transform_2(%arg0: i32) -> (i32, i32) {
    %c0_i32 = arith.constant 0 : i32
    %c0_i32_0 = arith.constant 0 : i32
    return %arg0, %c0_i32 : i32, i32
  }
}

</mosaic_0001>

<bundles_post_ra>
// kernel: tpu_custom_call.1
= control target key start
LH: loop header
LB: loop body
LE: loop exit
PB: predicated region body
PF: predicated region fallthrough
CT: control target
= control target key end

     0   :  { %7 = vsyncpa [#allocation3], 0  ;;  %s668_s0 = inlined_call_operand.hbm [shape: bf16[128,128], index: 0, kind: input, shape index: {}]   ;;  %s669_s1 = inlined_call_operand.hbm [shape: bf16[128,256], index: 1, kind: input, shape index: {}]   ;;  %s670_s2 = inlined_call_operand.hbm [shape: bf16[128,256], index: 2, kind: output, shape index: {}]  }
   0x1   :  { %8 = vsyncpa [#allocation6], 0 }
   0x2   :  { %9 = vsyncpa [#allocation4], 0  ;;  %s622_s9 = smov [#allocation2]  }
   0x3   :  { %s15_s10 = sshll.u32 %s622_s9, 4  ;;  %s16_s10 = int_to_ptr.vmem [resolvable:$true] %s15_s10 }
   0x4   :  { %s564_s11 = scalar_lea.vmem %s16_s10, 1024  ;;  %p569_p1 = scmp.lt.s32.totalorder %s16_s10, %s16_s10 }
   0x5   :  { %p565_p0 = scmp.ne.s32.totalorder %s16_s10, %s564_s11  ;;  %p570_p2 = scmp.lt.s32.totalorder %s564_s11, %s564_s11 }
   0x7   :  { %p571_p3 = por %p570_p2, %p569_p1 }
   0x9   :  { %p572_p4 = pnand %p571_p3, %p565_p0 }
   0xb   :  { %575 = shalt.err (!%p572_p4)
}
   0xc   :  { %s623_s12 = smov 64   ;;  %s624_s13 = smov 4  }
   0xd   :  { %21 = dma.hbm_to_vmem [thread:$0]  %s668_s0, 1024, %s16_s10, [#allocation3], %s623_s12, %s623_s12, %s624_s13  }
   0xe   :  { %s625_s16 = smov [#allocation5]  }
   0xf   :  { %s27_s17 = sshll.u32 %s625_s16, 4  ;;  %s28_s17 = int_to_ptr.vmem [resolvable:$true] %s27_s17 }
  0x10   :  { %s584_s18 = scalar_lea.vmem %s28_s17, 2048  ;;  %p589_p6 = scmp.lt.s32.totalorder %s28_s17, %s28_s17 }
  0x11   :  { %p585_p5 = scmp.ne.s32.totalorder %s28_s17, %s584_s18  ;;  %p590_p7 = scmp.lt.s32.totalorder %s584_s18, %s584_s18 }
  0x13   :  { %p591_p8 = por %p590_p7, %p589_p6 }
  0x15   :  { %p592_p9 = pnand %p591_p8, %p585_p5 }
  0x17   :  { %595 = shalt.err (!%p592_p9)
}
  0x18   :  { %s626_s19 = smov 128   ;;  %s627_s20 = smov 8  }
  0x19   :  { %33 = dma.hbm_to_vmem [thread:$0]  %s669_s1, 2048, %s28_s17, [#allocation6], %s626_s19, %s626_s19, %s627_s20  }
  0x1a   :  { %616 = dma.done.wait [#allocation3], 1024  }
  0x1b   :  { %617 = vsyncadd [#allocation3], 4294966272 }
  0x1c   :  { %618 = dma.done.wait [#allocation6], 2048  }
  0x1d   :  { %619 = vsyncadd [#allocation6], 4294965248  ;;  %v628_v0 = vmov 0   ;;  %v524_v1 = vld [vmem:[#allocation5 + $0x74] ss:$8 sps:$4 sm:$0xff]   ;;  %v548_v17 = vld [vmem:[#allocation2] sm:$0xff]  }
  0x1e   :  { %233 = vmatprep.mubr.bf16.mxu0 %v628_v0  ;;  %273 = vmatprep.mubr.bf16.mxu1 %v628_v0  ;;  %v526_v2 = vld [vmem:[#allocation5 + $0x70] ss:$8 sps:$4 sm:$0xff]   ;;  %v527_v3 = vld [vmem:[#allocation5 + $0x64] ss:$8 sps:$4 sm:$0xff]   ;;  %v529_v4 = vld [vmem:[#allocation5 + $0x60] ss:$8 sps:$4 sm:$0xff]  }
  0x1f   :  { %201 = vmatprep.subr.bf16.mxu0 %v524_v1  ;;  %500 = vmatprep.subr.bf16.mxu1 %v524_v1  ;;  %v530_v5 = vld [vmem:[#allocation5 + $0x54] ss:$8 sps:$4 sm:$0xff]   ;;  %v532_v6 = vld [vmem:[#allocation5 + $0x50] ss:$8 sps:$4 sm:$0xff]   ;;  %v533_v7 = vld [vmem:[#allocation5 + $0x44] ss:$8 sps:$4 sm:$0xff]  }
  0x20   :  { %202 = vmatpush1.bf16.msra.mxu0 %v526_v2  ;;  %508 = vmatpush1.bf16.msra.mxu1 %v526_v2  ;;  %v535_v8 = vld [vmem:[#allocation5 + $0x40] ss:$8 sps:$4 sm:$0xff]   ;;  %v536_v9 = vld [vmem:[#allocation5 + $0x34] ss:$8 sps:$4 sm:$0xff]   ;;  %v538_v10 = vld [vmem:[#allocation5 + $0x30] ss:$8 sps:$4 sm:$0xff]  }
  0x21   :  { %203 = vmatprep.subr.bf16.mxu0 %v527_v3  ;;  %501 = vmatprep.subr.bf16.mxu1 %v527_v3  ;;  %v539_v11 = vld [vmem:[#allocation5 + $0x24] ss:$8 sps:$4 sm:$0xff]   ;;  %v541_v12 = vld [vmem:[#allocation5 + $0x20] ss:$8 sps:$4 sm:$0xff]   ;;  %v542_v13 = vld [vmem:[#allocation5 + $0x14] ss:$8 sps:$4 sm:$0xff]  }
  0x22   :  { %v544_v14 = vld [vmem:[#allocation5 + $0x10] ss:$8 sps:$4 sm:$0xff]   ;;  %v545_v15 = vld [vmem:[#allocation5 + $0x4] ss:$8 sps:$4 sm:$0xff]   ;;  %v547_v16 = vld [vmem:[#allocation5] ss:$8 sps:$4 sm:$0xff]  }
  0x23   :  { %v549_v18 = vld [vmem:[#allocation2 + $0x20] sm:$0xff]   ;;  %v550_v19 = vld [vmem:[#allocation2 + $0x8] sm:$0xff]   ;;  %v552_v21 = vld [vmem:[#allocation2 + $0x10] sm:$0xff]   ;;  %s629_s0 = smov [#allocation7]  }
  0x24   :  { %204 = vmatpush1.bf16.msra.mxu0 %v529_v4  ;;  %509 = vmatpush1.bf16.msra.mxu1 %v529_v4  ;;  %v551_v20 = vld [vmem:[#allocation2 + $0x28] sm:$0xff]   ;;  %v553_v22 = vld [vmem:[#allocation2 + $0x30] sm:$0xff]   ;;  %v554_v23 = vld [vmem:[#allocation2 + $0x18] sm:$0xff]   ;;  %s431_s1 = sshll.u32 %s629_s0, 4  ;;  %s432_s1 = int_to_ptr.vmem [resolvable:$true] %s431_s1 }
  0x25   :  { %205 = vmatprep.subr.bf16.mxu0 %v530_v5  ;;  %502 = vmatprep.subr.bf16.mxu1 %v530_v5  ;;  %v555_v24 = vld [vmem:[#allocation2 + $0x38] sm:$0xff]   ;;  %s596_s23 = scalar_lea.vmem %s432_s1, 2048  ;;  %p601_p11 = scmp.lt.s32.totalorder %s432_s1, %s432_s1 }
  0x26   :  { %p597_p10 = scmp.ne.s32.totalorder %s432_s1, %s596_s23  ;;  %p602_p12 = scmp.lt.s32.totalorder %s596_s23, %s596_s23 }
  0x28   :  { %206 = vmatpush1.bf16.msra.mxu0 %v532_v6  ;;  %510 = vmatpush1.bf16.msra.mxu1 %v532_v6  ;;  %p603_p13 = por %p602_p12, %p601_p11 }
  0x29   :  { %207 = vmatprep.subr.bf16.mxu0 %v533_v7  ;;  %503 = vmatprep.subr.bf16.mxu1 %v533_v7 }
  0x2a   :  { %p604_p0 = pnand %p603_p13, %p597_p10 }
  0x2c   :  { %208 = vmatpush1.bf16.msra.mxu0 %v535_v8  ;;  %511 = vmatpush1.bf16.msra.mxu1 %v535_v8 }
  0x2d   :  { %209 = vmatprep.subr.bf16.mxu0 %v536_v9  ;;  %504 = vmatprep.subr.bf16.mxu1 %v536_v9 }
  0x30   :  { %210 = vmatpush1.bf16.msra.mxu0 %v538_v10  ;;  %512 = vmatpush1.bf16.msra.mxu1 %v538_v10 }
  0x31   :  { %211 = vmatprep.subr.bf16.mxu0 %v539_v11  ;;  %505 = vmatprep.subr.bf16.mxu1 %v539_v11 }
  0x34   :  { %212 = vmatpush1.bf16.msra.mxu0 %v541_v12  ;;  %513 = vmatpush1.bf16.msra.mxu1 %v541_v12 }
  0x35   :  { %213 = vmatprep.subr.bf16.mxu0 %v542_v13  ;;  %506 = vmatprep.subr.bf16.mxu1 %v542_v13 }
  0x38   :  { %214 = vmatpush1.bf16.msra.mxu0 %v544_v14  ;;  %514 = vmatpush1.bf16.msra.mxu1 %v544_v14 }
  0x39   :  { %215 = vmatprep.subr.bf16.mxu0 %v545_v15  ;;  %507 = vmatprep.subr.bf16.mxu1 %v545_v15 }
  0x3c   :  { %216 = vmatpush1.bf16.msra.mxu0 %v547_v16  ;;  %515 = vmatpush1.bf16.msra.mxu1 %v547_v16 }
  0x3f   :  { %234 = vmatmul.mubr.bf16.vlgmr.msra.gmra.mxu0 %v548_v17  ;;  %274 = vmatmul.mubr.bf16.vlgmr.msra.gmra.mxu1 %v549_v18 }
  0x40   :  { %243 = vmatprep.mubr.bf16.mxu0 %v628_v0  ;;  %283 = vmatprep.mubr.bf16.mxu1 %v628_v0 }
  0x47   :  { %244 = vmatmul.mubr.bf16.gmra.mxu0 %v550_v19  ;;  %284 = vmatmul.mubr.bf16.gmra.mxu1 %v551_v20 }
  0x48   :  { %253 = vmatprep.mubr.bf16.mxu0 %v628_v0  ;;  %293 = vmatprep.mubr.bf16.mxu1 %v628_v0 }
  0x4f   :  { %254 = vmatmul.mubr.bf16.gmra.mxu0 %v552_v21  ;;  %294 = vmatmul.mubr.bf16.gmra.mxu1 %v553_v22 }
  0x50   :  { %263 = vmatprep.mubr.bf16.mxu0 %v628_v0  ;;  %303 = vmatprep.mubr.bf16.mxu1 %v628_v0 }
  0x57   :  { %264 = vmatmul.mubr.bf16.gmra.mxu0 %v554_v23  ;;  %304 = vmatmul.mubr.bf16.gmra.mxu1 %v555_v24 }
  0xff   :  { %v235_v25 = vpop.f32.mrf.mxu0  ;;  %v275_v26 = vpop.f32.mrf.mxu1 }
 0x101   :  { %v237_v27 = vpop.f32.mrf.mxu0  ;;  %v277_v28 = vpop.f32.mrf.mxu1 }
 0x102   :  { %v484_v29 = vpack.c.bf16 %v237_v27, %v235_v25  ;;  %v492_v30 = vpack.c.bf16 %v277_v28, %v275_v26 }
 0x103   :  { %v239_v31 = vpop.f32.mrf.mxu0  ;;  %v279_v32 = vpop.f32.mrf.mxu1 }
 0x104   :  { %410 = vst [vmem:[#allocation7] sm:$0xff] %v484_v29  ;;  %418 = vst [vmem:[#allocation7 + $0x40] sm:$0xff] %v492_v30 }
 0x105   :  { %v241_v33 = vpop.f32.mrf.mxu0  ;;  %v281_v34 = vpop.f32.mrf.mxu1 }
 0x106   :  { %v485_v35 = vpack.c.bf16 %v241_v33, %v239_v31  ;;  %v493_v36 = vpack.c.bf16 %v281_v34, %v279_v32 }
 0x107   :  { %v245_v37 = vpop.f32.mrf.mxu0  ;;  %v285_v38 = vpop.f32.mrf.mxu1 }
 0x108   :  { %411 = vst [vmem:[#allocation7 + $0x8] sm:$0xff] %v485_v35  ;;  %419 = vst [vmem:[#allocation7 + $0x48] sm:$0xff] %v493_v36 }
 0x109   :  { %v247_v39 = vpop.f32.mrf.mxu0  ;;  %v287_v40 = vpop.f32.mrf.mxu1 }
 0x10a   :  { %v486_v41 = vpack.c.bf16 %v247_v39, %v245_v37  ;;  %v494_v42 = vpack.c.bf16 %v287_v40, %v285_v38 }
 0x10b   :  { %v249_v43 = vpop.f32.mrf.mxu0  ;;  %v289_v44 = vpop.f32.mrf.mxu1 }
 0x10c   :  { %412 = vst [vmem:[#allocation7 + $0x10] sm:$0xff] %v486_v41  ;;  %420 = vst [vmem:[#allocation7 + $0x50] sm:$0xff] %v494_v42 }
 0x10d   :  { %v251_v45 = vpop.f32.mrf.mxu0  ;;  %v291_v46 = vpop.f32.mrf.mxu1 }
 0x10e   :  { %v487_v47 = vpack.c.bf16 %v251_v45, %v249_v43  ;;  %v495_v48 = vpack.c.bf16 %v291_v46, %v289_v44 }
 0x10f   :  { %v255_v49 = vpop.f32.mrf.mxu0  ;;  %v295_v50 = vpop.f32.mrf.mxu1 }
 0x110   :  { %413 = vst [vmem:[#allocation7 + $0x18] sm:$0xff] %v487_v47  ;;  %421 = vst [vmem:[#allocation7 + $0x58] sm:$0xff] %v495_v48 }
 0x111   :  { %v257_v51 = vpop.f32.mrf.mxu0  ;;  %v297_v52 = vpop.f32.mrf.mxu1 }
 0x112   :  { %v488_v53 = vpack.c.bf16 %v257_v51, %v255_v49  ;;  %v496_v54 = vpack.c.bf16 %v297_v52, %v295_v50 }
 0x113   :  { %v259_v55 = vpop.f32.mrf.mxu0  ;;  %v299_v56 = vpop.f32.mrf.mxu1 }
 0x114   :  { %414 = vst [vmem:[#allocation7 + $0x20] sm:$0xff] %v488_v53  ;;  %422 = vst [vmem:[#allocation7 + $0x60] sm:$0xff] %v496_v54 }
 0x115   :  { %v261_v57 = vpop.f32.mrf.mxu0  ;;  %v301_v58 = vpop.f32.mrf.mxu1 }
 0x116   :  { %v489_v59 = vpack.c.bf16 %v261_v57, %v259_v55  ;;  %v497_v60 = vpack.c.bf16 %v301_v58, %v299_v56 }
 0x117   :  { %v265_v61 = vpop.f32.mrf.mxu0  ;;  %v305_v62 = vpop.f32.mrf.mxu1 }
 0x118   :  { %415 = vst [vmem:[#allocation7 + $0x28] sm:$0xff] %v489_v59  ;;  %423 = vst [vmem:[#allocation7 + $0x68] sm:$0xff] %v497_v60 }
 0x119   :  { %v267_v63 = vpop.f32.mrf.mxu0  ;;  %v307_v0 = vpop.f32.mrf.mxu1 }
 0x11a   :  { %v490_v1 = vpack.c.bf16 %v267_v63, %v265_v61  ;;  %v498_v2 = vpack.c.bf16 %v307_v0, %v305_v62 }
 0x11b   :  { %v269_v3 = vpop.f32.mrf.mxu0  ;;  %v309_v4 = vpop.f32.mrf.mxu1 }
 0x11c   :  { %416 = vst [vmem:[#allocation7 + $0x30] sm:$0xff] %v490_v1  ;;  %424 = vst [vmem:[#allocation7 + $0x70] sm:$0xff] %v498_v2 }
 0x11d   :  { %v271_v5 = vpop.f32.mrf.mxu0  ;;  %v311_v6 = vpop.f32.mrf.mxu1 }
 0x11e   :  { %v491_v7 = vpack.c.bf16 %v271_v5, %v269_v3  ;;  %v499_v8 = vpack.c.bf16 %v311_v6, %v309_v4 }
 0x120   :  { %417 = vst [vmem:[#allocation7 + $0x38] sm:$0xff] %v491_v7  ;;  %425 = vst [vmem:[#allocation7 + $0x78] sm:$0xff] %v499_v8 }
 0x121   :  { %607 = shalt.err (!%p604_p0)
}
 0x122   :  { %437 = dma.vmem_to_hbm [thread:$0]  %s432_s1, 2048, %s670_s2, [#allocation4], %s626_s19, %s626_s19, %s627_s20  }
 0x123   :  { %620 = dma.done.wait [#allocation4], 2048  }
 0x124   :  { %621 = vsyncadd [#allocation4], 4294965248 }
 0x125   :  { %441 = vsyncpa [#allocation3], 1 }
 0x126   :  { %442 = vsyncpa [#allocation6], 1 }
 0x127   :  { %443 = vsyncpa [#allocation4], 1 }

</bundles_post_ra>
